<compile_context>
chip_gen: v5e
topology: v5e:2x2
jax: 0.10.0
libtpu: 0.0.40
codegen_flags: <defaults>
</compile_context>

<pallas_src>
import functools
import math

import numpy as np
import jax
import jax.numpy as jnp
from jax.experimental import pallas as pl
from jax.experimental.pallas import tpu as pltpu

HOP_LENGTH = 16   # hparams.hop_length == self.upsample_factor


def _interp_coeffs_np(l_in, l_out):
    """PyTorch F.interpolate(mode='linear', align_corners=False) tap indices/weights."""
    i = np.arange(l_out, dtype=np.float32)
    scale = np.float32(l_in / l_out)
    src = np.maximum((i + np.float32(0.5)) * scale - np.float32(0.5), np.float32(0.0))
    left = np.minimum(np.floor(src).astype(np.int32), l_in - 1)
    frac = (src - left.astype(np.float32)).astype(np.float32)
    right = np.minimum(left + 1, l_in - 1)
    return left, right, frac


def _band_tables(t, hop, tw, tw_b, tn, n_tiles):
    """Banded weight matrix W[tw_b, n_tiles*tn] + slab gather indices into x_ext.

    x_ext[:, c] = x_padded[:, c - 1]  (zero-prefixed padded input), and the slab for
    output tile n is x_ext[:, n*tw : n*tw + tw_b].  W row k of tile n corresponds to
    padded-input column n*tw - 1 + k.  The interpolation weights (including F.pad's
    zero column and the clamped final sample) are baked into W; out = slab @ W.
    """
    l_in, l_out = t + 1, t * hop + 1
    left, right, frac = _interp_coeffs_np(l_in, l_out)
    j = np.arange(l_out)
    n = j // tn
    slab_lo = n * tw - 1                          # padded-input column of slab row 0
    kl = left - slab_lo
    kr = right - slab_lo
    # Both taps must fall inside the tw_b-wide band (holds for all T>=1, hop>=1).
    assert kl.min() >= 0 and kr.max() < tw_b, "interpolation tap outside slab band"

    w = np.zeros((tw_b, n_tiles * tn), np.float32)
    w[kl, j] += (np.float32(1.0) - frac)
    w[kr, j] += frac                              # left==right (clamped last sample) sums to 1

    l_ext = (n_tiles - 1) * tw + tw_b             # columns of x_ext actually addressed
    idx = (np.arange(n_tiles)[:, None] * tw + np.arange(tw_b)[None, :]).reshape(-1)
    return jnp.asarray(w), jnp.asarray(idx, dtype=jnp.int32), l_ext


def _upsample_kernel(x_ref, w_ref, o_ref):
    # x: [tm, tw_b], W: [tw_b, tn], out: [tm, tn]  -- single banded matmul.
    o_ref[...] = jnp.dot(
        x_ref[...], w_ref[...], preferred_element_type=jnp.float32
    ).astype(o_ref.dtype)


def _forward(spect, hop_length):
    b, c, t = spect.shape
    l_out = t * hop_length + 1
    m = b * c

    # ---- tiling --------------------------------------------------------------
    lane = 128
    tw_b = 128                                        # K per tile (slab width, lane aligned)
    step = lane // math.gcd(lane, hop_length)         # tw*hop must be a multiple of 128
    tw = (tw_b - 3) // step * step                    # frames per output tile (slab tw+3 <= tw_b)
    tw = min(tw, max(step, (2048 // hop_length) // step * step))   # cap lane tile ~2K
    assert tw >= 1, "hop_length incompatible with chosen tile sizes"
    tn = tw * hop_length                              # output columns per tile (multiple of 128)
    n_tiles = pl.cdiv(l_out, tn)

    mt = pl.cdiv(m, 256)                              # M tiles targeting <=256 rows each,
    tm = ((m + mt - 1) // mt + 7) // 8 * 8            # chosen so last-tile padding is <= 7 rows
    m_tiles = pl.cdiv(m, tm)
    if n_tiles == 1 and m_tiles == 1 and m >= 16:     # give a v7x megacore >=2 parallel tiles
        tm = -(-((m + 1) // 2) // 8) * 8
        m_tiles = pl.cdiv(m, tm)

    # ---- host-side prep: O(M*T) gather + O(L_out) weights, never O(T^2) -------
    w, idx, l_ext = _band_tables(t, hop_length, tw, tw_b, tn, n_tiles)

    x = spect.reshape(m, t).astype(jnp.float32)
    # Zero-prefixed padded input: x_ext[:, c] = x_padded[:, c-1]; trailing zeros
    # include F.pad's zero column (no [B, C, T+1] intermediate materialized).
    x_ext = jnp.pad(x, ((0, 0), (1, l_ext - 1 - t)))
    x_slabs = jnp.take(x_ext, idx, axis=1)            # [m, n_tiles * tw_b], contiguous slabs

    out = pl.pallas_call(
        _upsample_kernel,
        out_shape=jax.ShapeDtypeStruct((m, l_out), spect.dtype),
        grid=(n_tiles, m_tiles),                       # m innermost -> W DMA'd once per n
        in_specs=[
            pl.BlockSpec((tm, tw_b), lambda n, i: (i, n)),
            pl.BlockSpec((tw_b, tn), lambda n, i: (0, n)),
        ],
        out_specs=pl.BlockSpec((tm, tn), lambda n, i: (i, n)),
        compiler_params=pltpu.CompilerParams(
            dimension_semantics=("parallel", "parallel")),
    )(x_slabs, w)

    return out.reshape(b, c, l_out)


@functools.partial(jax.jit, static_argnames=("hop_length",))
def upsampler_forward(spect, hop_length=HOP_LENGTH):
    return _forward(spect, hop_length)


def _reference(spect, hop_length=HOP_LENGTH):
    # Pure-JAX reference of the PyTorch forward (gather form).
    b, c, t = spect.shape
    l_in, l_out = t + 1, t * hop_length + 1
    x = jnp.pad(spect.astype(jnp.float32), ((0, 0), (0, 0), (0, 1)))
    left, right, frac = _interp_coeffs_np(l_in, l_out)
    frac = jnp.asarray(frac)
    out = (1.0 - frac)[None, None, :] * x[..., left] + frac[None, None, :] * x[..., right]
    return out.astype(spect.dtype)


if __name__ == "__main__":
    key = jax.random.PRNGKey(0)
    k1, k2 = jax.random.split(key)

    # Small smoke test (single tile along both grid axes, partial edge blocks).
    B, C, T = 2, 4, 8
    spect = jax.random.normal(k1, (B, C, T), dtype=jnp.float32)
    out = jax.block_until_ready(upsampler_forward(spect))
    assert out.shape == (B, C, T * HOP_LENGTH + 1), out.shape
    ref = _reference(spect)
    assert jnp.allclose(out, ref, atol=1e-5, rtol=1e-5), \
        float(jnp.max(jnp.abs(out - ref)))

    # Larger test: multi-tile index maps and masked edge tiles
    # (m = 320 -> 2 M tiles; l_out = 4801 -> 3 N tiles, last one partial).
    B2, C2, T2 = 4, 80, 300
    spect2 = jax.random.normal(k2, (B2, C2, T2), dtype=jnp.float32)
    out2 = jax.block_until_ready(upsampler_forward(spect2))
    assert out2.shape == (B2, C2, T2 * HOP_LENGTH + 1), out2.shape
    ref2 = _reference(spect2)
    assert jnp.allclose(out2, ref2, atol=1e-5, rtol=1e-5), \
        float(jnp.max(jnp.abs(out2 - ref2)))

    print("KERNEL_OK")
</pallas_src>

<mosaic_0001>
module attributes {stable_mosaic.version = 11 : i64} {
  func.func @_upsample_kernel(%arg0: i32, %arg1: i32, %arg2: memref<8x128xf32, #tpu.memory_space<vmem>>, %arg3: memref<128x1920xf32, #tpu.memory_space<vmem>>, %arg4: memref<8x1920xf32, #tpu.memory_space<vmem>>) attributes {dimension_semantics = [#tpu.dimension_semantics<parallel>, #tpu.dimension_semantics<parallel>], iteration_bounds = array<i64: 1, 1>, scalar_prefetch = 0 : i64, scratch_operands = 0 : i64, tpu.core_type = #tpu.core_type<tc>, window_params = [{transform_indices = @transform_0, window_bounds = array<i64: 8, 128>}, {transform_indices = @transform_1, window_bounds = array<i64: 128, 1920>}, {transform_indices = @transform_2, window_bounds = array<i64: 8, 1920>}]} {
    %c0 = arith.constant 0 : index
    %c0_0 = arith.constant 0 : index
    %0 = vector.load %arg2[%c0, %c0_0] : memref<8x128xf32, #tpu.memory_space<vmem>>, vector<8x128xf32>
    %c0_1 = arith.constant 0 : index
    %c0_2 = arith.constant 0 : index
    %1 = vector.load %arg3[%c0_1, %c0_2] : memref<128x1920xf32, #tpu.memory_space<vmem>>, vector<128x1920xf32>
    %cst = arith.constant dense<0.000000e+00> : vector<8x1920xf32>
    %2 = tpu.matmul %0, %1, %cst {dimension_numbers = #tpu.dot_dimension_numbers<[1], [0], [0], [1], [0, 0, 1, 1], [], []>} : vector<8x128xf32>, vector<128x1920xf32>, vector<8x1920xf32> -> vector<8x1920xf32>
    %c0_3 = arith.constant 0 : index
    %c0_4 = arith.constant 0 : index
    %3 = vector.load %arg4[%c0_3, %c0_4] : memref<8x1920xf32, #tpu.memory_space<vmem>>, vector<8x1920xf32>
    tpu.vector_store %arg4[%c0_3, %c0_4], %2 {strides = array<i32>} : memref<8x1920xf32, #tpu.memory_space<vmem>>, vector<8x1920xf32>,
    return
  }
  func.func @transform_0(%arg0: i32, %arg1: i32) -> (i32, i32) {
    %c0_i32 = arith.constant 0 : i32
    return %arg1, %arg0 : i32, i32
  }
  func.func @transform_1(%arg0: i32, %arg1: i32) -> (i32, i32) {
    %c0_i32 = arith.constant 0 : i32
    %c0_i32_0 = arith.constant 0 : i32
    return %c0_i32, %arg0 : i32, i32
  }
  func.func @transform_2(%arg0: i32, %arg1: i32) -> (i32, i32) {
    %c0_i32 = arith.constant 0 : i32
    return %arg1, %arg0 : i32, i32
  }
}

</mosaic_0001>

<bundles_post_ra>
// kernel: upsampler_forward.1
= control target key start
LH: loop header
LB: loop body
LE: loop exit
PB: predicated region body
PF: predicated region fallthrough
CT: control target
= control target key end

     0   :  { %7 = vsyncpa [#allocation3], 0  ;;  %s640_s12 = smov [#allocation2]   ;;  %s641_s14 = smov 1920   ;;  %s687_s0 = inlined_call_operand.vmem [shape: f32[8,128], index: 0, kind: input, shape index: {}]   ;;  %s688_s1 = inlined_call_operand.hbm [shape: f32[128,1920], index: 1, kind: input, shape index: {}]   ;;  %s689_s2 = inlined_call_operand.vmem [shape: f32[8,129], index: 2, kind: output, shape index: {}]  }
   0x1   :  { %s14_s11 = sshll.u32 %s688_s1, 4  ;;  %s16_s13 = sshll.u32 %s640_s12, 4  ;;  %s15_s11 = int_to_ptr.hbm [resolvable:$true] %s14_s11  ;;  %s17_s13 = int_to_ptr.vmem [resolvable:$true] %s16_s13 }
   0x2   :  { %s642_s15 = smov 120  }
   0x3   :  { %22 = dma.hbm_to_vmem [thread:$0]  %s15_s11, 30720, %s17_s13, [#allocation3], %s641_s14, %s641_s14, %s642_s15  }
   0x4   :  { %638 = dma.done.wait [#allocation3], 30720  }
   0x5   :  { %639 = vsyncadd [#allocation3], 4294936576  ;;  %v255_v0 = vld [vmem:[#allocation2 + $0x718] sm:$0xff]  ;;  %v240_v1 = vld [vmem:[#allocation2 + $0x6a0] sm:$0xff] }
   0x6   :  { %308 = vmatpush.msra.mxu2 %v255_v0  ;;  %v253_v2 = vld [vmem:[#allocation2 + $0x708] sm:$0xff]  ;;  %v254_v3 = vld [vmem:[#allocation2 + $0x710] sm:$0xff]  ;;  %v239_v6 = vld [vmem:[#allocation2 + $0x698] sm:$0xff] }
   0x7   :  { %v225_v4 = vld [vmem:[#allocation2 + $0x628] sm:$0xff]  ;;  %268 = vmatpush.msra.mxu0 %v253_v2  ;;  %288 = vmatpush.msra.mxu1 %v254_v3  ;;  %v238_v5 = vld [vmem:[#allocation2 + $0x690] sm:$0xff]  ;;  %v223_v7 = vld [vmem:[#allocation2 + $0x618] sm:$0xff] }
   0x8   :  { %309 = vmatpush.msra.mxu2 %v240_v1  ;;  %v224_v8 = vld [vmem:[#allocation2 + $0x620] sm:$0xff]  ;;  %v210_v9 = vld [vmem:[#allocation2 + $0x5b0] sm:$0xff]  ;;  %v209_v11 = vld [vmem:[#allocation2 + $0x5a8] sm:$0xff] }
   0x9   :  { %269 = vmatpush.msra.mxu0 %v238_v5  ;;  %289 = vmatpush.msra.mxu1 %v239_v6  ;;  %v208_v10 = vld [vmem:[#allocation2 + $0x5a0] sm:$0xff]  ;;  %v195_v12 = vld [vmem:[#allocation2 + $0x538] sm:$0xff]  ;;  %v193_v13 = vld [vmem:[#allocation2 + $0x528] sm:$0xff] }
   0xa   :  { %310 = vmatpush.msra.mxu2 %v225_v4  ;;  %v194_v14 = vld [vmem:[#allocation2 + $0x530] sm:$0xff]  ;;  %v180_v15 = vld [vmem:[#allocation2 + $0x4c0] sm:$0xff]  ;;  %v179_v17 = vld [vmem:[#allocation2 + $0x4b8] sm:$0xff] }
   0xb   :  { %270 = vmatpush.msra.mxu0 %v223_v7  ;;  %290 = vmatpush.msra.mxu1 %v224_v8  ;;  %v178_v16 = vld [vmem:[#allocation2 + $0x4b0] sm:$0xff]  ;;  %v165_v18 = vld [vmem:[#allocation2 + $0x448] sm:$0xff]  ;;  %v163_v19 = vld [vmem:[#allocation2 + $0x438] sm:$0xff] }
   0xc   :  { %311 = vmatpush.msra.mxu2 %v210_v9  ;;  %v164_v20 = vld [vmem:[#allocation2 + $0x440] sm:$0xff]  ;;  %v150_v21 = vld [vmem:[#allocation2 + $0x3d0] sm:$0xff]  ;;  %v149_v23 = vld [vmem:[#allocation2 + $0x3c8] sm:$0xff] }
   0xd   :  { %271 = vmatpush.msra.mxu0 %v208_v10  ;;  %291 = vmatpush.msra.mxu1 %v209_v11  ;;  %v148_v22 = vld [vmem:[#allocation2 + $0x3c0] sm:$0xff]  ;;  %v135_v24 = vld [vmem:[#allocation2 + $0x358] sm:$0xff]  ;;  %v133_v26 = vld [vmem:[#allocation2 + $0x348] sm:$0xff] }
   0xe   :  { %312 = vmatpush.msra.mxu2 %v195_v12  ;;  %v256_v25 = vld [vmem:[#allocation2 + $0x720] sm:$0xff]  ;;  %v134_v27 = vld [vmem:[#allocation2 + $0x350] sm:$0xff]  ;;  %v241_v28 = vld [vmem:[#allocation2 + $0x6a8] sm:$0xff] }
   0xf   :  { %272 = vmatpush.msra.mxu0 %v193_v13  ;;  %292 = vmatpush.msra.mxu1 %v194_v14  ;;  %v120_v29 = vld [vmem:[#allocation2 + $0x2e0] sm:$0xff]  ;;  %v226_v30 = vld [vmem:[#allocation2 + $0x630] sm:$0xff]  ;;  %v119_v32 = vld [vmem:[#allocation2 + $0x2d8] sm:$0xff] }
  0x10   :  { %313 = vmatpush.msra.mxu2 %v180_v15  ;;  %328 = vmatpush.msra.mxu3 %v256_v25  ;;  %v118_v31 = vld [vmem:[#allocation2 + $0x2d0] sm:$0xff]  ;;  %v105_v33 = vld [vmem:[#allocation2 + $0x268] sm:$0xff]  ;;  %v211_v34 = vld [vmem:[#allocation2 + $0x5b8] sm:$0xff] }
  0x11   :  { %273 = vmatpush.msra.mxu0 %v178_v16  ;;  %293 = vmatpush.msra.mxu1 %v179_v17  ;;  %v103_v35 = vld [vmem:[#allocation2 + $0x258] sm:$0xff]  ;;  %v104_v36 = vld [vmem:[#allocation2 + $0x260] sm:$0xff]  ;;  %v90_v37 = vld [vmem:[#allocation2 + $0x1f0] sm:$0xff] }
  0x12   :  { %314 = vmatpush.msra.mxu2 %v165_v18  ;;  %329 = vmatpush.msra.mxu3 %v241_v28  ;;  %v196_v38 = vld [vmem:[#allocation2 + $0x540] sm:$0xff]  ;;  %v89_v40 = vld [vmem:[#allocation2 + $0x1e8] sm:$0xff]  ;;  %v75_v41 = vld [vmem:[#allocation2 + $0x178] sm:$0xff] }
  0x13   :  { %274 = vmatpush.msra.mxu0 %v163_v19  ;;  %294 = vmatpush.msra.mxu1 %v164_v20  ;;  %v88_v39 = vld [vmem:[#allocation2 + $0x1e0] sm:$0xff]  ;;  %v181_v42 = vld [vmem:[#allocation2 + $0x4c8] sm:$0xff]  ;;  %v74_v44 = vld [vmem:[#allocation2 + $0x170] sm:$0xff] }
  0x14   :  { %315 = vmatpush.msra.mxu2 %v150_v21  ;;  %330 = vmatpush.msra.mxu3 %v226_v30  ;;  %v73_v43 = vld [vmem:[#allocation2 + $0x168] sm:$0xff]  ;;  %v60_v45 = vld [vmem:[#allocation2 + $0x100] sm:$0xff]  ;;  %v166_v46 = vld [vmem:[#allocation2 + $0x450] sm:$0xff] }
  0x15   :  { %275 = vmatpush.msra.mxu0 %v148_v22  ;;  %295 = vmatpush.msra.mxu1 %v149_v23  ;;  %v58_v47 = vld [vmem:[#allocation2 + $0xf0] sm:$0xff]  ;;  %v59_v48 = vld [vmem:[#allocation2 + $0xf8] sm:$0xff]  ;;  %v45_v49 = vld [vmem:[#allocation2 + $0x88] sm:$0xff] }
  0x16   :  { %316 = vmatpush.msra.mxu2 %v135_v24  ;;  %331 = vmatpush.msra.mxu3 %v211_v34  ;;  %v151_v50 = vld [vmem:[#allocation2 + $0x3d8] sm:$0xff]  ;;  %v44_v52 = vld [vmem:[#allocation2 + $0x80] sm:$0xff]  ;;  %v30_v53 = vld [vmem:[#allocation2 + $0x10] sm:$0xff] }
  0x17   :  { %276 = vmatpush.msra.mxu0 %v133_v26  ;;  %296 = vmatpush.msra.mxu1 %v134_v27  ;;  %v43_v51 = vld [vmem:[#allocation2 + $0x78] sm:$0xff]  ;;  %v136_v54 = vld [vmem:[#allocation2 + $0x360] sm:$0xff]  ;;  %v29_v57 = vld [vmem:[#allocation2 + $0x8] sm:$0xff] }
  0x18   :  { %317 = vmatpush.msra.mxu2 %v120_v29  ;;  %332 = vmatpush.msra.mxu3 %v196_v38  ;;  %v259_v55 = vld [vmem:[#allocation2 + $0x738] sm:$0xff]  ;;  %v28_v56 = vld [vmem:[#allocation2] sm:$0xff]  ;;  %v257_v58 = vld [vmem:[#allocation2 + $0x728] sm:$0xff] }
  0x19   :  { %277 = vmatpush.msra.mxu0 %v118_v31  ;;  %297 = vmatpush.msra.mxu1 %v119_v32  ;;  %v244_v59 = vld [vmem:[#allocation2 + $0x6c0] sm:$0xff]  ;;  %v258_v60 = vld [vmem:[#allocation2 + $0x730] sm:$0xff]  ;;  %v121_v62 = vld [vmem:[#allocation2 + $0x2e8] sm:$0xff] }
  0x1a   :  { %318 = vmatpush.msra.mxu2 %v105_v33  ;;  %333 = vmatpush.msra.mxu3 %v181_v42  ;;  %v242_v61 = vld [vmem:[#allocation2 + $0x6b0] sm:$0xff]  ;;  %v229_v63 = vld [vmem:[#allocation2 + $0x648] sm:$0xff]  ;;  %v243_v0 = vld [vmem:[#allocation2 + $0x6b8] sm:$0xff] }
  0x1b   :  { %278 = vmatpush.msra.mxu0 %v103_v35  ;;  %298 = vmatpush.msra.mxu1 %v104_v36  ;;  %v227_v1 = vld [vmem:[#allocation2 + $0x638] sm:$0xff]  ;;  %v106_v2 = vld [vmem:[#allocation2 + $0x270] sm:$0xff]  ;;  %v228_v4 = vld [vmem:[#allocation2 + $0x640] sm:$0xff] }
  0x1c   :  { %319 = vmatpush.msra.mxu2 %v90_v37  ;;  %334 = vmatpush.msra.mxu3 %v166_v46  ;;  %v214_v3 = vld [vmem:[#allocation2 + $0x5d0] sm:$0xff]  ;;  %v212_v5 = vld [vmem:[#allocation2 + $0x5c0] sm:$0xff]  ;;  %v91_v6 = vld [vmem:[#allocation2 + $0x1f8] sm:$0xff] }
  0x1d   :  { %279 = vmatpush.msra.mxu0 %v88_v39  ;;  %299 = vmatpush.msra.mxu1 %v89_v40  ;;  %v199_v7 = vld [vmem:[#allocation2 + $0x558] sm:$0xff]  ;;  %v213_v8 = vld [vmem:[#allocation2 + $0x5c8] sm:$0xff]  ;;  %v76_v10 = vld [vmem:[#allocation2 + $0x180] sm:$0xff] }
  0x1e   :  { %320 = vmatpush.msra.mxu2 %v75_v41  ;;  %335 = vmatpush.msra.mxu3 %v151_v50  ;;  %v197_v9 = vld [vmem:[#allocation2 + $0x548] sm:$0xff]  ;;  %v184_v11 = vld [vmem:[#allocation2 + $0x4e0] sm:$0xff]  ;;  %v198_v12 = vld [vmem:[#allocation2 + $0x550] sm:$0xff] }
  0x1f   :  { %280 = vmatpush.msra.mxu0 %v73_v43  ;;  %300 = vmatpush.msra.mxu1 %v74_v44  ;;  %v182_v13 = vld [vmem:[#allocation2 + $0x4d0] sm:$0xff]  ;;  %v61_v14 = vld [vmem:[#allocation2 + $0x108] sm:$0xff]  ;;  %v183_v16 = vld [vmem:[#allocation2 + $0x4d8] sm:$0xff] }
  0x20   :  { %321 = vmatpush.msra.mxu2 %v60_v45  ;;  %336 = vmatpush.msra.mxu3 %v136_v54  ;;  %v169_v15 = vld [vmem:[#allocation2 + $0x468] sm:$0xff]  ;;  %v167_v17 = vld [vmem:[#allocation2 + $0x458] sm:$0xff]  ;;  %v46_v18 = vld [vmem:[#allocation2 + $0x90] sm:$0xff] }
  0x21   :  { %281 = vmatpush.msra.mxu0 %v58_v47  ;;  %301 = vmatpush.msra.mxu1 %v59_v48  ;;  %v154_v19 = vld [vmem:[#allocation2 + $0x3f0] sm:$0xff]  ;;  %v168_v20 = vld [vmem:[#allocation2 + $0x460] sm:$0xff]  ;;  %v31_v22 = vld [vmem:[#allocation2 + $0x18] sm:$0xff] }
  0x22   :  { %322 = vmatpush.msra.mxu2 %v45_v49  ;;  %337 = vmatpush.msra.mxu3 %v121_v62  ;;  %v152_v21 = vld [vmem:[#allocation2 + $0x3e0] sm:$0xff]  ;;  %v139_v23 = vld [vmem:[#allocation2 + $0x378] sm:$0xff]  ;;  %v153_v24 = vld [vmem:[#allocation2 + $0x3e8] sm:$0xff] }
  0x23   :  { %282 = vmatpush.msra.mxu0 %v43_v51  ;;  %302 = vmatpush.msra.mxu1 %v44_v52  ;;  %v137_v25 = vld [vmem:[#allocation2 + $0x368] sm:$0xff]  ;;  %v664_v26 = vld [vmem:[%s687_s0] sm:$0xff]  ;;  %v138_v28 = vld [vmem:[#allocation2 + $0x370] sm:$0xff] }
  0x24   :  { %323 = vmatpush.msra.mxu2 %v30_v53  ;;  %338 = vmatpush.msra.mxu3 %v106_v2  ;;  %v124_v27 = vld [vmem:[#allocation2 + $0x300] sm:$0xff]  ;;  %v122_v29 = vld [vmem:[#allocation2 + $0x2f0] sm:$0xff]  ;;  %v109_v31 = vld [vmem:[#allocation2 + $0x288] sm:$0xff] }
  0x25   :  { %283 = vmatpush.msra.mxu0 %v28_v56  ;;  %303 = vmatpush.msra.mxu1 %v29_v57  ;;  %v260_v30 = vld [vmem:[#allocation2 + $0x740] sm:$0xff]  ;;  %v123_v32 = vld [vmem:[#allocation2 + $0x2f8] sm:$0xff]  ;;  %v245_v34 = vld [vmem:[#allocation2 + $0x6c8] sm:$0xff] }
  0x26   :  { %388 = vmatpush.msrb.mxu2 %v259_v55  ;;  %339 = vmatpush.msra.mxu3 %v91_v6  ;;  %v107_v33 = vld [vmem:[#allocation2 + $0x278] sm:$0xff]  ;;  %v94_v35 = vld [vmem:[#allocation2 + $0x210] sm:$0xff]  ;;  %v108_v36 = vld [vmem:[#allocation2 + $0x280] sm:$0xff] }
  0x27   :  { %348 = vmatpush.msrb.mxu0 %v257_v58  ;;  %368 = vmatpush.msrb.mxu1 %v258_v60  ;;  %v92_v37 = vld [vmem:[#allocation2 + $0x200] sm:$0xff]  ;;  %v230_v38 = vld [vmem:[#allocation2 + $0x650] sm:$0xff]  ;;  %v79_v39 = vld [vmem:[#allocation2 + $0x198] sm:$0xff] }
  0x28   :  { %389 = vmatpush.msrb.mxu2 %v244_v59  ;;  %340 = vmatpush.msra.mxu3 %v76_v10  ;;  %v93_v40 = vld [vmem:[#allocation2 + $0x208] sm:$0xff]  ;;  %v64_v42 = vld [vmem:[#allocation2 + $0x120] sm:$0xff]  ;;  %v78_v43 = vld [vmem:[#allocation2 + $0x190] sm:$0xff] }
  0x29   :  { %349 = vmatpush.msrb.mxu0 %v242_v61  ;;  %369 = vmatpush.msrb.mxu1 %v243_v0  ;;  %v77_v41 = vld [vmem:[#allocation2 + $0x188] sm:$0xff]  ;;  %v62_v44 = vld [vmem:[#allocation2 + $0x110] sm:$0xff]  ;;  %v215_v45 = vld [vmem:[#allocation2 + $0x5d8] sm:$0xff] }
  0x2a   :  { %390 = vmatpush.msrb.mxu2 %v229_v63  ;;  %341 = vmatpush.msra.mxu3 %v61_v14  ;;  %v49_v46 = vld [vmem:[#allocation2 + $0xa8] sm:$0xff]  ;;  %v63_v47 = vld [vmem:[#allocation2 + $0x118] sm:$0xff]  ;;  %v200_v49 = vld [vmem:[#allocation2 + $0x560] sm:$0xff] }
  0x2b   :  { %350 = vmatpush.msrb.mxu0 %v227_v1  ;;  %370 = vmatpush.msrb.mxu1 %v228_v4  ;;  %v47_v48 = vld [vmem:[#allocation2 + $0x98] sm:$0xff]  ;;  %v34_v50 = vld [vmem:[#allocation2 + $0x30] sm:$0xff]  ;;  %v48_v51 = vld [vmem:[#allocation2 + $0xa0] sm:$0xff] }
  0x2c   :  { %391 = vmatpush.msrb.mxu2 %v214_v3  ;;  %342 = vmatpush.msra.mxu3 %v46_v18  ;;  %v263_v52 = vld [vmem:[#allocation2 + $0x758] sm:$0xff]  ;;  %v32_v53 = vld [vmem:[#allocation2 + $0x20] sm:$0xff]  ;;  %v33_v54 = vld [vmem:[#allocation2 + $0x28] sm:$0xff] }
  0x2d   :  { %351 = vmatpush.msrb.mxu0 %v212_v5  ;;  %371 = vmatpush.msrb.mxu1 %v213_v8  ;;  %v248_v55 = vld [vmem:[#allocation2 + $0x6e0] sm:$0xff]  ;;  %v261_v56 = vld [vmem:[#allocation2 + $0x748] sm:$0xff]  ;;  %v262_v57 = vld [vmem:[#allocation2 + $0x750] sm:$0xff] }
  0x2e   :  { %392 = vmatpush.msrb.mxu2 %v199_v7  ;;  %343 = vmatpush.msra.mxu3 %v31_v22  ;;  %v185_v58 = vld [vmem:[#allocation2 + $0x4e8] sm:$0xff]  ;;  %v246_v60 = vld [vmem:[#allocation2 + $0x6d0] sm:$0xff]  ;;  %v247_v61 = vld [vmem:[#allocation2 + $0x6d8] sm:$0xff] }
  0x2f   :  { %352 = vmatpush.msrb.mxu0 %v197_v9  ;;  %372 = vmatpush.msrb.mxu1 %v198_v12  ;;  %v233_v59 = vld [vmem:[#allocation2 + $0x668] sm:$0xff]  ;;  %v170_v62 = vld [vmem:[#allocation2 + $0x470] sm:$0xff]  ;;  %v231_v0 = vld [vmem:[#allocation2 + $0x658] sm:$0xff] }
  0x30   :  { %393 = vmatpush.msrb.mxu2 %v184_v11  ;;  %408 = vmatpush.msrb.mxu3 %v260_v30  ;;  %v218_v63 = vld [vmem:[#allocation2 + $0x5f0] sm:$0xff]  ;;  %v232_v1 = vld [vmem:[#allocation2 + $0x660] sm:$0xff]  ;;  %v155_v2 = vld [vmem:[#allocation2 + $0x3f8] sm:$0xff] }
  0x31   :  { %353 = vmatpush.msrb.mxu0 %v182_v13  ;;  %373 = vmatpush.msrb.mxu1 %v183_v16  ;;  %v203_v3 = vld [vmem:[#allocation2 + $0x578] sm:$0xff]  ;;  %v216_v4 = vld [vmem:[#allocation2 + $0x5e0] sm:$0xff]  ;;  %v217_v5 = vld [vmem:[#allocation2 + $0x5e8] sm:$0xff] }
  0x32   :  { %394 = vmatpush.msrb.mxu2 %v169_v15  ;;  %409 = vmatpush.msrb.mxu3 %v245_v34  ;;  %v140_v6 = vld [vmem:[#allocation2 + $0x380] sm:$0xff]  ;;  %v201_v8 = vld [vmem:[#allocation2 + $0x568] sm:$0xff]  ;;  %v202_v9 = vld [vmem:[#allocation2 + $0x570] sm:$0xff] }
  0x33   :  { %354 = vmatpush.msrb.mxu0 %v167_v17  ;;  %374 = vmatpush.msrb.mxu1 %v168_v20  ;;  %v188_v7 = vld [vmem:[#allocation2 + $0x500] sm:$0xff]  ;;  %v125_v10 = vld [vmem:[#allocation2 + $0x308] sm:$0xff]  ;;  %v186_v12 = vld [vmem:[#allocation2 + $0x4f0] sm:$0xff] }
  0x34   :  { %395 = vmatpush.msrb.mxu2 %v154_v19  ;;  %410 = vmatpush.msrb.mxu3 %v230_v38  ;;  %v173_v11 = vld [vmem:[#allocation2 + $0x488] sm:$0xff]  ;;  %v187_v13 = vld [vmem:[#allocation2 + $0x4f8] sm:$0xff]  ;;  %v110_v14 = vld [vmem:[#allocation2 + $0x290] sm:$0xff] }
  0x35   :  { %355 = vmatpush.msrb.mxu0 %v152_v21  ;;  %375 = vmatpush.msrb.mxu1 %v153_v24  ;;  %v158_v15 = vld [vmem:[#allocation2 + $0x410] sm:$0xff]  ;;  %v171_v16 = vld [vmem:[#allocation2 + $0x478] sm:$0xff]  ;;  %v172_v17 = vld [vmem:[#allocation2 + $0x480] sm:$0xff] }
  0x36   :  { %396 = vmatpush.msrb.mxu2 %v139_v23  ;;  %304 = vmatmul.f32.vlgmr.msra.gmra.mxu1 %v664_v26  ;;  %v95_v18 = vld [vmem:[#allocation2 + $0x218] sm:$0xff]  ;;  %v156_v20 = vld [vmem:[#allocation2 + $0x400] sm:$0xff]  ;;  %v157_v21 = vld [vmem:[#allocation2 + $0x408] sm:$0xff] }
  0x37   :  { %356 = vmatpush.msrb.mxu0 %v137_v25  ;;  %324 = vmatmul.f32.vlgmr.msra.gmra.mxu2 %v664_v26  ;;  %v143_v19 = vld [vmem:[#allocation2 + $0x398] sm:$0xff]  ;;  %v80_v22 = vld [vmem:[#allocation2 + $0x1a0] sm:$0xff]  ;;  %v141_v24 = vld [vmem:[#allocation2 + $0x388] sm:$0xff] }
  0x38   :  { %397 = vmatpush.msrb.mxu2 %v124_v27  ;;  %376 = vmatpush.msrb.mxu1 %v138_v28  ;;  %v128_v23 = vld [vmem:[#allocation2 + $0x320] sm:$0xff]  ;;  %v142_v25 = vld [vmem:[#allocation2 + $0x390] sm:$0xff]  ;;  %v65_v27 = vld [vmem:[#allocation2 + $0x128] sm:$0xff] }
  0x39   :  { %357 = vmatpush.msrb.mxu0 %v122_v29  ;;  %411 = vmatpush.msrb.mxu3 %v215_v45  ;;  %v113_v28 = vld [vmem:[#allocation2 + $0x2a8] sm:$0xff]  ;;  %v126_v29 = vld [vmem:[#allocation2 + $0x310] sm:$0xff]  ;;  %v127_v30 = vld [vmem:[#allocation2 + $0x318] sm:$0xff] }
  0x3a   :  { %398 = vmatpush.msrb.mxu2 %v109_v31  ;;  %377 = vmatpush.msrb.mxu1 %v123_v32  ;;  %v50_v31 = vld [vmem:[#allocation2 + $0xb0] sm:$0xff]  ;;  %v112_v34 = vld [vmem:[#allocation2 + $0x2a0] sm:$0xff]  ;;  %v97_v38 = vld [vmem:[#allocation2 + $0x228] sm:$0xff] }
  0x3b   :  { %358 = vmatpush.msrb.mxu0 %v107_v33  ;;  %412 = vmatpush.msrb.mxu3 %v200_v49  ;;  %v98_v32 = vld [vmem:[#allocation2 + $0x230] sm:$0xff]  ;;  %v111_v33 = vld [vmem:[#allocation2 + $0x298] sm:$0xff] }
  0x3c   :  { %399 = vmatpush.msrb.mxu2 %v94_v35  ;;  %378 = vmatpush.msrb.mxu1 %v108_v36  ;;  %v35_v35 = vld [vmem:[#allocation2 + $0x38] sm:$0xff] }
  0x3d   :  { %359 = vmatpush.msrb.mxu0 %v92_v37  ;;  %413 = vmatpush.msrb.mxu3 %v185_v58  ;;  %v83_v36 = vld [vmem:[#allocation2 + $0x1b8] sm:$0xff]  ;;  %v96_v37 = vld [vmem:[#allocation2 + $0x220] sm:$0xff]  ;;  %v266_v58 = vld [vmem:[#allocation2 + $0x770] sm:$0xff] }
  0x3e   :  { %400 = vmatpush.msrb.mxu2 %v79_v39  ;;  %379 = vmatpush.msrb.mxu1 %v93_v40  ;;  %v68_v39 = vld [vmem:[#allocation2 + $0x140] sm:$0xff]  ;;  %v81_v40 = vld [vmem:[#allocation2 + $0x1a8] sm:$0xff]  ;;  %v67_v45 = vld [vmem:[#allocation2 + $0x138] sm:$0xff] }
  0x3f   :  { %360 = vmatpush.msrb.mxu0 %v77_v41  ;;  %414 = vmatpush.msrb.mxu3 %v170_v62  ;;  %v82_v41 = vld [vmem:[#allocation2 + $0x1b0] sm:$0xff]  ;;  %v51_v49 = vld [vmem:[#allocation2 + $0xb8] sm:$0xff] }
  0x40   :  { %401 = vmatpush.msrb.mxu2 %v64_v42  ;;  %380 = vmatpush.msrb.mxu1 %v78_v43  ;;  %v53_v42 = vld [vmem:[#allocation2 + $0xc8] sm:$0xff]  ;;  %v264_v43 = vld [vmem:[#allocation2 + $0x760] sm:$0xff]  ;;  %v251_v62 = vld [vmem:[#allocation2 + $0x6f8] sm:$0xff] }
  0x41   :  { %361 = vmatpush.msrb.mxu0 %v62_v44  ;;  %415 = vmatpush.msrb.mxu3 %v155_v2  ;;  %v66_v44 = vld [vmem:[#allocation2 + $0x130] sm:$0xff]  ;;  %v236_v2 = vld [vmem:[#allocation2 + $0x680] sm:$0xff] }
  0x42   :  { %402 = vmatpush.msrb.mxu2 %v49_v46  ;;  %381 = vmatpush.msrb.mxu1 %v63_v47  ;;  %v38_v46 = vld [vmem:[#allocation2 + $0x50] sm:$0xff]  ;;  %v249_v47 = vld [vmem:[#allocation2 + $0x6e8] sm:$0xff] }
  0x43   :  { %362 = vmatpush.msrb.mxu0 %v47_v48  ;;  %416 = vmatpush.msrb.mxu3 %v140_v6  ;;  %v267_v48 = vld [vmem:[#allocation2 + $0x778] sm:$0xff]  ;;  %v221_v6 = vld [vmem:[#allocation2 + $0x608] sm:$0xff] }
  0x44   :  { %403 = vmatpush.msrb.mxu2 %v34_v50  ;;  %382 = vmatpush.msrb.mxu1 %v48_v51  ;;  %v52_v50 = vld [vmem:[#allocation2 + $0xc0] sm:$0xff]  ;;  %v234_v51 = vld [vmem:[#allocation2 + $0x670] sm:$0xff] }
  0x45   :  { %363 = vmatpush.msrb.mxu0 %v32_v53  ;;  %417 = vmatpush.msrb.mxu3 %v125_v10  ;;  %v36_v53 = vld [vmem:[#allocation2 + $0x40] sm:$0xff]  ;;  %v206_v10 = vld [vmem:[#allocation2 + $0x590] sm:$0xff] }
  0x46   :  { %468 = vmatpush.msra.mxu2 %v263_v52  ;;  %383 = vmatpush.msrb.mxu1 %v33_v54  ;;  %v252_v52 = vld [vmem:[#allocation2 + $0x700] sm:$0xff]  ;;  %v37_v54 = vld [vmem:[#allocation2 + $0x48] sm:$0xff] }
  0x47   :  { %284 = vmatmul.f32.vlgmr.msra.gmra.mxu0 %v664_v26  ;;  %418 = vmatpush.msrb.mxu3 %v110_v14  ;;  %v191_v14 = vld [vmem:[#allocation2 + $0x518] sm:$0xff] }
  0x48   :  { %469 = vmatpush.msra.mxu2 %v248_v55  ;;  %428 = vmatpush.msra.mxu0 %v261_v56  ;;  %v237_v55 = vld [vmem:[#allocation2 + $0x688] sm:$0xff]  ;;  %v219_v56 = vld [vmem:[#allocation2 + $0x5f8] sm:$0xff] }
  0x49   :  { %448 = vmatpush.msra.mxu1 %v262_v57  ;;  %419 = vmatpush.msrb.mxu3 %v95_v18  ;;  %v265_v57 = vld [vmem:[#allocation2 + $0x768] sm:$0xff]  ;;  %v176_v18 = vld [vmem:[#allocation2 + $0x4a0] sm:$0xff] }
  0x4a   :  { %470 = vmatpush.msra.mxu2 %v233_v59  ;;  %429 = vmatpush.msra.mxu0 %v246_v60  ;;  %v222_v59 = vld [vmem:[#allocation2 + $0x610] sm:$0xff]  ;;  %v204_v60 = vld [vmem:[#allocation2 + $0x580] sm:$0xff] }
  0x4b   :  { %449 = vmatpush.msra.mxu1 %v247_v61  ;;  %420 = vmatpush.msrb.mxu3 %v80_v22  ;;  %v250_v61 = vld [vmem:[#allocation2 + $0x6f0] sm:$0xff]  ;;  %v161_v22 = vld [vmem:[#allocation2 + $0x428] sm:$0xff] }
  0x4c   :  { %471 = vmatpush.msra.mxu2 %v218_v63  ;;  %430 = vmatpush.msra.mxu0 %v231_v0  ;;  %v207_v63 = vld [vmem:[#allocation2 + $0x598] sm:$0xff]  ;;  %v189_v0 = vld [vmem:[#allocation2 + $0x508] sm:$0xff] }
  0x4d   :  { %450 = vmatpush.msra.mxu1 %v232_v1  ;;  %421 = vmatpush.msrb.mxu3 %v65_v27  ;;  %v235_v1 = vld [vmem:[#allocation2 + $0x678] sm:$0xff]  ;;  %v146_v27 = vld [vmem:[#allocation2 + $0x3b0] sm:$0xff] }
  0x4e   :  { %472 = vmatpush.msra.mxu2 %v203_v3  ;;  %431 = vmatpush.msra.mxu0 %v216_v4  ;;  %v192_v3 = vld [vmem:[#allocation2 + $0x520] sm:$0xff]  ;;  %v174_v4 = vld [vmem:[#allocation2 + $0x490] sm:$0xff] }
  0x4f   :  { %451 = vmatpush.msra.mxu1 %v217_v5  ;;  %422 = vmatpush.msrb.mxu3 %v50_v31  ;;  %v220_v5 = vld [vmem:[#allocation2 + $0x600] sm:$0xff]  ;;  %v131_v31 = vld [vmem:[#allocation2 + $0x338] sm:$0xff] }
  0x50   :  { %473 = vmatpush.msra.mxu2 %v188_v7  ;;  %432 = vmatpush.msra.mxu0 %v201_v8  ;;  %v177_v7 = vld [vmem:[#allocation2 + $0x4a8] sm:$0xff]  ;;  %v159_v8 = vld [vmem:[#allocation2 + $0x418] sm:$0xff] }
  0x51   :  { %452 = vmatpush.msra.mxu1 %v202_v9  ;;  %423 = vmatpush.msrb.mxu3 %v35_v35  ;;  %v205_v9 = vld [vmem:[#allocation2 + $0x588] sm:$0xff]  ;;  %v116_v35 = vld [vmem:[#allocation2 + $0x2c0] sm:$0xff] }
  0x52   :  { %474 = vmatpush.msra.mxu2 %v173_v11  ;;  %433 = vmatpush.msra.mxu0 %v186_v12  ;;  %v162_v11 = vld [vmem:[#allocation2 + $0x430] sm:$0xff]  ;;  %v144_v12 = vld [vmem:[#allocation2 + $0x3a0] sm:$0xff] }
  0x53   :  { %453 = vmatpush.msra.mxu1 %v187_v13  ;;  %344 = vmatmul.f32.vlgmr.msra.gmra.mxu3 %v664_v26  ;;  %v190_v13 = vld [vmem:[#allocation2 + $0x510] sm:$0xff] }
  0x54   :  { %475 = vmatpush.msra.mxu2 %v158_v15  ;;  %434 = vmatpush.msra.mxu0 %v171_v16  ;;  %v147_v15 = vld [vmem:[#allocation2 + $0x3b8] sm:$0xff]  ;;  %v129_v16 = vld [vmem:[#allocation2 + $0x328] sm:$0xff] }
  0x55   :  { %454 = vmatpush.msra.mxu1 %v172_v17  ;;  %404 = vmatmul.f32.vlgmr.msrb.gmra.mxu2 %v664_v26  ;;  %v175_v17 = vld [vmem:[#allocation2 + $0x498] sm:$0xff] }
  0x56   :  { %476 = vmatpush.msra.mxu2 %v143_v19  ;;  %435 = vmatpush.msra.mxu0 %v156_v20  ;;  %v132_v19 = vld [vmem:[#allocation2 + $0x340] sm:$0xff]  ;;  %v114_v20 = vld [vmem:[#allocation2 + $0x2b0] sm:$0xff] }
  0x57   :  { %455 = vmatpush.msra.mxu1 %v157_v21  ;;  %488 = vmatpush.msra.mxu3 %v264_v43  ;;  %v160_v21 = vld [vmem:[#allocation2 + $0x420] sm:$0xff]  ;;  %v86_v43 = vld [vmem:[#allocation2 + $0x1d0] sm:$0xff] }
  0x58   :  { %477 = vmatpush.msra.mxu2 %v128_v23  ;;  %436 = vmatpush.msra.mxu0 %v141_v24  ;;  %v117_v23 = vld [vmem:[#allocation2 + $0x2c8] sm:$0xff]  ;;  %v99_v24 = vld [vmem:[#allocation2 + $0x238] sm:$0xff] }
  0x59   :  { %456 = vmatpush.msra.mxu1 %v142_v25  ;;  %489 = vmatpush.msra.mxu3 %v249_v47  ;;  %v145_v25 = vld [vmem:[#allocation2 + $0x3a8] sm:$0xff]  ;;  %v55_v47 = vld [vmem:[#allocation2 + $0xd8] sm:$0xff] }
  0x5a   :  { %478 = vmatpush.msra.mxu2 %v113_v28  ;;  %437 = vmatpush.msra.mxu0 %v126_v29  ;;  %v102_v28 = vld [vmem:[#allocation2 + $0x250] sm:$0xff]  ;;  %v84_v29 = vld [vmem:[#allocation2 + $0x1c0] sm:$0xff] }
  0x5b   :  { %457 = vmatpush.msra.mxu1 %v127_v30  ;;  %490 = vmatpush.msra.mxu3 %v234_v51  ;;  %v130_v30 = vld [vmem:[#allocation2 + $0x330] sm:$0xff] }
  0x5c   :  { %479 = vmatpush.msra.mxu2 %v98_v32  ;;  %438 = vmatpush.msra.mxu0 %v111_v33  ;;  %v87_v32 = vld [vmem:[#allocation2 + $0x1d8] sm:$0xff]  ;;  %v69_v33 = vld [vmem:[#allocation2 + $0x148] sm:$0xff] }
  0x5d   :  { %458 = vmatpush.msra.mxu1 %v112_v34  ;;  %364 = vmatmul.f32.vlgmr.msrb.gmra.mxu0 %v664_v26  ;;  %v115_v34 = vld [vmem:[#allocation2 + $0x2b8] sm:$0xff] }
  0x5e   :  { %480 = vmatpush.msra.mxu2 %v83_v36  ;;  %439 = vmatpush.msra.mxu0 %v96_v37  ;;  %v72_v36 = vld [vmem:[#allocation2 + $0x160] sm:$0xff]  ;;  %v54_v37 = vld [vmem:[#allocation2 + $0xd0] sm:$0xff] }
  0x5f   :  { %459 = vmatpush.msra.mxu1 %v97_v38  ;;  %491 = vmatpush.msra.mxu3 %v219_v56  ;;  %v100_v38 = vld [vmem:[#allocation2 + $0x240] sm:$0xff] }
  0x60   :  { %481 = vmatpush.msra.mxu2 %v68_v39  ;;  %440 = vmatpush.msra.mxu0 %v81_v40  ;;  %v101_v39 = vld [vmem:[#allocation2 + $0x248] sm:$0xff] }
  0x61   :  { %460 = vmatpush.msra.mxu1 %v82_v41  ;;  %492 = vmatpush.msra.mxu3 %v204_v60  ;;  %v57_v40 = vld [vmem:[#allocation2 + $0xe8] sm:$0xff]  ;;  %v39_v41 = vld [vmem:[#allocation2 + $0x58] sm:$0xff] }
  0x62   :  { %482 = vmatpush.msra.mxu2 %v53_v42  ;;  %441 = vmatpush.msra.mxu0 %v66_v44  ;;  %v85_v42 = vld [vmem:[#allocation2 + $0x1c8] sm:$0xff]  ;;  %v42_v44 = vld [vmem:[#allocation2 + $0x70] sm:$0xff] }
  0x63   :  { %461 = vmatpush.msra.mxu1 %v67_v45  ;;  %493 = vmatpush.msra.mxu3 %v189_v0  ;;  %v70_v45 = vld [vmem:[#allocation2 + $0x150] sm:$0xff] }
  0x64   :  { %483 = vmatpush.msra.mxu2 %v38_v46  ;;  %442 = vmatpush.msra.mxu0 %v51_v49  ;;  %v71_v46 = vld [vmem:[#allocation2 + $0x158] sm:$0xff]  ;;  %v40_v49 = vld [vmem:[#allocation2 + $0x60] sm:$0xff] }
  0x65   :  { %462 = vmatpush.msra.mxu1 %v52_v50  ;;  %494 = vmatpush.msra.mxu3 %v174_v4  ;;  %v41_v50 = vld [vmem:[#allocation2 + $0x68] sm:$0xff] }
  0x66   :  { %548 = vmatpush.msrb.mxu2 %v267_v48  ;;  %443 = vmatpush.msra.mxu0 %v36_v53  ;;  %v56_v48 = vld [vmem:[#allocation2 + $0xe0] sm:$0xff] }
  0x67   :  { %463 = vmatpush.msra.mxu1 %v37_v54  ;;  %495 = vmatpush.msra.mxu3 %v159_v8 }
  0x68   :  { %549 = vmatpush.msrb.mxu2 %v252_v52  ;;  %384 = vmatmul.f32.vlgmr.msrb.gmra.mxu1 %v664_v26 }
  0x69   :  { %508 = vmatpush.msrb.mxu0 %v265_v57  ;;  %528 = vmatpush.msrb.mxu1 %v266_v58 }
  0x6a   :  { %550 = vmatpush.msrb.mxu2 %v237_v55  ;;  %496 = vmatpush.msra.mxu3 %v144_v12 }
  0x6b   :  { %509 = vmatpush.msrb.mxu0 %v250_v61  ;;  %529 = vmatpush.msrb.mxu1 %v251_v62 }
  0x6c   :  { %551 = vmatpush.msrb.mxu2 %v222_v59  ;;  %497 = vmatpush.msra.mxu3 %v129_v16 }
  0x6d   :  { %510 = vmatpush.msrb.mxu0 %v235_v1  ;;  %530 = vmatpush.msrb.mxu1 %v236_v2 }
  0x6e   :  { %552 = vmatpush.msrb.mxu2 %v207_v63  ;;  %498 = vmatpush.msra.mxu3 %v114_v20 }
  0x6f   :  { %511 = vmatpush.msrb.mxu0 %v220_v5  ;;  %531 = vmatpush.msrb.mxu1 %v221_v6 }
  0x70   :  { %553 = vmatpush.msrb.mxu2 %v192_v3  ;;  %499 = vmatpush.msra.mxu3 %v99_v24 }
  0x71   :  { %512 = vmatpush.msrb.mxu0 %v205_v9  ;;  %532 = vmatpush.msrb.mxu1 %v206_v10 }
  0x72   :  { %554 = vmatpush.msrb.mxu2 %v177_v7  ;;  %424 = vmatmul.f32.vlgmr.msrb.gmra.mxu3 %v664_v26 }
  0x73   :  { %513 = vmatpush.msrb.mxu0 %v190_v13  ;;  %533 = vmatpush.msrb.mxu1 %v191_v14 }
  0x74   :  { %555 = vmatpush.msrb.mxu2 %v162_v11  ;;  %500 = vmatpush.msra.mxu3 %v84_v29 }
  0x75   :  { %514 = vmatpush.msrb.mxu0 %v175_v17  ;;  %534 = vmatpush.msrb.mxu1 %v176_v18 }
  0x76   :  { %556 = vmatpush.msrb.mxu2 %v147_v15  ;;  %501 = vmatpush.msra.mxu3 %v69_v33 }
  0x77   :  { %515 = vmatpush.msrb.mxu0 %v160_v21  ;;  %535 = vmatpush.msrb.mxu1 %v161_v22 }
  0x78   :  { %557 = vmatpush.msrb.mxu2 %v132_v19  ;;  %502 = vmatpush.msra.mxu3 %v54_v37 }
  0x79   :  { %516 = vmatpush.msrb.mxu0 %v145_v25  ;;  %536 = vmatpush.msrb.mxu1 %v146_v27 }
  0x7a   :  { %558 = vmatpush.msrb.mxu2 %v117_v23  ;;  %444 = vmatmul.f32.vlgmr.msra.gmra.mxu0 %v664_v26 }
  0x7b   :  { %484 = vmatmul.f32.vlgmr.msra.gmra.mxu2 %v664_v26  ;;  %517 = vmatpush.msrb.mxu0 %v130_v30 }
  0x7c   :  { %559 = vmatpush.msrb.mxu2 %v102_v28  ;;  %537 = vmatpush.msrb.mxu1 %v131_v31 }
  0x7d   :  { %518 = vmatpush.msrb.mxu0 %v115_v34  ;;  %464 = vmatmul.f32.vlgmr.msra.gmra.mxu1 %v664_v26 }
  0x7e   :  { %560 = vmatpush.msrb.mxu2 %v87_v32  ;;  %538 = vmatpush.msrb.mxu1 %v116_v35 }
  0x7f   :  { %519 = vmatpush.msrb.mxu0 %v100_v38  ;;  %503 = vmatpush.msra.mxu3 %v39_v41 }
  0x80   :  { %561 = vmatpush.msrb.mxu2 %v72_v36  ;;  %539 = vmatpush.msrb.mxu1 %v101_v39 }
  0x81   :  { %520 = vmatpush.msrb.mxu0 %v85_v42  ;;  %504 = vmatmul.f32.vlgmr.msra.gmra.mxu3 %v664_v26 }
  0x82   :  { %562 = vmatpush.msrb.mxu2 %v57_v40  ;;  %540 = vmatpush.msrb.mxu1 %v86_v43 }
  0x83   :  { %521 = vmatpush.msrb.mxu0 %v70_v45 }
  0x84   :  { %563 = vmatpush.msrb.mxu2 %v42_v44  ;;  %541 = vmatpush.msrb.mxu1 %v71_v46 }
  0x85   :  { %564 = vmatmul.f32.vlgmr.msrb.gmra.mxu2 %v664_v26  ;;  %522 = vmatpush.msrb.mxu0 %v55_v47 }
  0x86   :  { %542 = vmatpush.msrb.mxu1 %v56_v48 }
  0x87   :  { %523 = vmatpush.msrb.mxu0 %v40_v49 }
  0x88   :  { %543 = vmatpush.msrb.mxu1 %v41_v50  ;;  %524 = vmatmul.f32.vlgmr.msrb.gmra.mxu0 %v664_v26 }
  0x89   :  { %544 = vmatmul.f32.vlgmr.msrb.gmra.mxu1 %v664_v26 }
  0xb3   :  { %v305_v52 = vpop.f32.mrf.mxu1 }
  0xb4   :  { %600 = vst [vmem:[%s689_s2 + $0x8] sm:$0xff] %v305_v52 }
  0xba   :  { %v325_v51 = vpop.f32.mrf.mxu2 }
  0xc4   :  { %v285_v53 = vpop.f32.mrf.mxu0 }
  0xc5   :  { %598 = vst [vmem:[%s689_s2] sm:$0xff] %v285_v53 }
  0xd6   :  { %v345_v54 = vpop.f32.mrf.mxu3 }
  0xd8   :  { %v405_v55 = vpop.f32.mrf.mxu2 }
  0xda   :  { %v365_v56 = vpop.f32.mrf.mxu0 }
  0xe5   :  { %v385_v57 = vpop.f32.mrf.mxu1 }
  0xf5   :  { %v425_v58 = vpop.f32.mrf.mxu3 }
  0xf7   :  { %v445_v60 = vpop.f32.mrf.mxu0 }
  0xfa   :  { %v465_v61 = vpop.f32.mrf.mxu1 }
  0xfe   :  { %v485_v59 = vpop.f32.mrf.mxu2 }
 0x104   :  { %v505_v26 = vpop.f32.mrf.mxu3 }
 0x105   :  { %v525_v62 = vpop.f32.mrf.mxu0 }
 0x106   :  { %v545_v63 = vpop.f32.mrf.mxu1 }
 0x108   :  { %v565_v0 = vpop.f32.mrf.mxu2 }
 0x109   :  { %606 = vsyncpa [#allocation3], 1 }

</bundles_post_ra>
